<compile_context>
chip_gen: v7x
topology: tpu7x:2x2x1
jax: 0.10.0
libtpu: 0.0.40
codegen_flags: <defaults>
</compile_context>

<pallas_src>
import jax
import jax.numpy as jnp
from jax.experimental import pallas as pl
from jax.experimental.pallas import tpu as pltpu


def _cat_transpose_kernel(x_ref, w_ref, b_ref, o_ref):
    # x_ref: (N, 5) f32 SMEM   -- x1
    # w_ref: (5, 1) f32 SMEM   -- linear.weight
    # b_ref: (5,)   f32 SMEM   -- linear.bias
    # o_ref: (5, N+2) f32 SMEM -- concat([x1, w.T, b], axis=0).T
    n = x_ref.shape[0]  # static Python int (N=2)
    # Fully unrolled scalar copy: 5*(N+2) = 20 SMEM word moves.  This fuses the
    # transpose and the concat, so no XLU relayout / masked vector stores are
    # needed and no wrapper-side transpose HLO exists.
    for r in range(5):
        for c in range(n):
            o_ref[r, c] = x_ref[c, r]      # transposed x1 block
        o_ref[r, n] = w_ref[r, 0]          # weight column
        o_ref[r, n + 1] = b_ref[r]         # bias column


def model_forward(x1, weight, bias):
    """x1:(N,5), weight:(5,1), bias:(5,) -> (5, N+2) f32."""
    n = x1.shape[0]
    # Review item: only cast if needed (avoid emitting no-op convert HLOs).
    if x1.dtype != jnp.float32:
        x1 = x1.astype(jnp.float32)
    if weight.dtype != jnp.float32:
        weight = weight.astype(jnp.float32)
    if bias.dtype != jnp.float32:
        bias = bias.astype(jnp.float32)

    out_shape = jax.ShapeDtypeStruct((5, n + 2), jnp.float32)
    bytes_accessed = 4 * (x1.size + weight.size + bias.size + 5 * (n + 2))

    return pl.pallas_call(
        _cat_transpose_kernel,
        out_shape=out_shape,
        # Everything is a handful of 32-bit words: keep it in SMEM, no grid,
        # no tiling, no VMEM double-buffering (per review: dispatch-bound).
        in_specs=[
            pl.BlockSpec(memory_space=pltpu.MemorySpace.SMEM),
            pl.BlockSpec(memory_space=pltpu.MemorySpace.SMEM),
            pl.BlockSpec(memory_space=pltpu.MemorySpace.SMEM),
        ],
        out_specs=pl.BlockSpec(memory_space=pltpu.MemorySpace.SMEM),
        cost_estimate=pl.CostEstimate(
            flops=0, transcendentals=0, bytes_accessed=bytes_accessed),
    )(x1, weight, bias)


if __name__ == "__main__":
    key = jax.random.PRNGKey(0)
    k_w, k_b = jax.random.split(key)

    # nn.Linear(1, 5) params: weight (5,1), bias (5,), both ~ U(-1, 1) (fan_in=1)
    weight = jax.random.uniform(k_w, (5, 1), jnp.float32, minval=-1.0, maxval=1.0)
    bias = jax.random.uniform(k_b, (5,), jnp.float32, minval=-1.0, maxval=1.0)

    # module-level input: x1 = torch.ones(2, 5)
    x1 = jnp.ones((2, 5), jnp.float32)

    out = jax.block_until_ready(model_forward(x1, weight, bias))

    # pure-JAX reference (nearest-valid interpretation of the fuzzed forward)
    v2 = jnp.concatenate([x1, weight.reshape(1, 5), bias.reshape(1, 5)], axis=0)
    ref = v2.T
    assert out.shape == (5, 4), out.shape
    assert jnp.allclose(out, ref, atol=1e-6), (out, ref)
    print("KERNEL_OK")
</pallas_src>

<mosaic_0001>
module attributes {stable_mosaic.version = 11 : i64} {
  func.func @_cat_transpose_kernel(%arg0: memref<2x5xf32, #tpu.memory_space<smem>>, %arg1: memref<5x1xf32, #tpu.memory_space<smem>>, %arg2: memref<5xf32, #tpu.memory_space<smem>>, %arg3: memref<5x4xf32, #tpu.memory_space<smem>>) attributes {dimension_semantics = [], scalar_prefetch = 0 : i64, scratch_operands = 0 : i64, tpu.core_type = #tpu.core_type<tc>} {
    %c0 = arith.constant 0 : index
    %c0_0 = arith.constant 0 : index
    %0 = memref.load %arg0[%c0, %c0_0] : memref<2x5xf32, #tpu.memory_space<smem>>
    %c0_1 = arith.constant 0 : index
    %c0_2 = arith.constant 0 : index
    %1 = memref.load %arg3[%c0_1, %c0_2] : memref<5x4xf32, #tpu.memory_space<smem>>
    memref.store %0, %arg3[%c0_1, %c0_2] : memref<5x4xf32, #tpu.memory_space<smem>>
    %c1 = arith.constant 1 : index
    %c0_3 = arith.constant 0 : index
    %2 = memref.load %arg0[%c1, %c0_3] : memref<2x5xf32, #tpu.memory_space<smem>>
    %c0_4 = arith.constant 0 : index
    %c1_5 = arith.constant 1 : index
    %3 = memref.load %arg3[%c0_4, %c1_5] : memref<5x4xf32, #tpu.memory_space<smem>>
    memref.store %2, %arg3[%c0_4, %c1_5] : memref<5x4xf32, #tpu.memory_space<smem>>
    %c0_6 = arith.constant 0 : index
    %c0_7 = arith.constant 0 : index
    %4 = memref.load %arg1[%c0_6, %c0_7] : memref<5x1xf32, #tpu.memory_space<smem>>
    %c0_8 = arith.constant 0 : index
    %c2 = arith.constant 2 : index
    %5 = memref.load %arg3[%c0_8, %c2] : memref<5x4xf32, #tpu.memory_space<smem>>
    memref.store %4, %arg3[%c0_8, %c2] : memref<5x4xf32, #tpu.memory_space<smem>>
    %c0_9 = arith.constant 0 : index
    %6 = memref.load %arg2[%c0_9] : memref<5xf32, #tpu.memory_space<smem>>
    %c0_10 = arith.constant 0 : index
    %c3 = arith.constant 3 : index
    %7 = memref.load %arg3[%c0_10, %c3] : memref<5x4xf32, #tpu.memory_space<smem>>
    memref.store %6, %arg3[%c0_10, %c3] : memref<5x4xf32, #tpu.memory_space<smem>>
    %c0_11 = arith.constant 0 : index
    %c1_12 = arith.constant 1 : index
    %8 = memref.load %arg0[%c0_11, %c1_12] : memref<2x5xf32, #tpu.memory_space<smem>>
    %c1_13 = arith.constant 1 : index
    %c0_14 = arith.constant 0 : index
    %9 = memref.load %arg3[%c1_13, %c0_14] : memref<5x4xf32, #tpu.memory_space<smem>>
    memref.store %8, %arg3[%c1_13, %c0_14] : memref<5x4xf32, #tpu.memory_space<smem>>
    %c1_15 = arith.constant 1 : index
    %c1_16 = arith.constant 1 : index
    %10 = memref.load %arg0[%c1_15, %c1_16] : memref<2x5xf32, #tpu.memory_space<smem>>
    %c1_17 = arith.constant 1 : index
    %c1_18 = arith.constant 1 : index
    %11 = memref.load %arg3[%c1_17, %c1_18] : memref<5x4xf32, #tpu.memory_space<smem>>
    memref.store %10, %arg3[%c1_17, %c1_18] : memref<5x4xf32, #tpu.memory_space<smem>>
    %c1_19 = arith.constant 1 : index
    %c0_20 = arith.constant 0 : index
    %12 = memref.load %arg1[%c1_19, %c0_20] : memref<5x1xf32, #tpu.memory_space<smem>>
    %c1_21 = arith.constant 1 : index
    %c2_22 = arith.constant 2 : index
    %13 = memref.load %arg3[%c1_21, %c2_22] : memref<5x4xf32, #tpu.memory_space<smem>>
    memref.store %12, %arg3[%c1_21, %c2_22] : memref<5x4xf32, #tpu.memory_space<smem>>
    %c1_23 = arith.constant 1 : index
    %14 = memref.load %arg2[%c1_23] : memref<5xf32, #tpu.memory_space<smem>>
    %c1_24 = arith.constant 1 : index
    %c3_25 = arith.constant 3 : index
    %15 = memref.load %arg3[%c1_24, %c3_25] : memref<5x4xf32, #tpu.memory_space<smem>>
    memref.store %14, %arg3[%c1_24, %c3_25] : memref<5x4xf32, #tpu.memory_space<smem>>
    %c0_26 = arith.constant 0 : index
    %c2_27 = arith.constant 2 : index
    %16 = memref.load %arg0[%c0_26, %c2_27] : memref<2x5xf32, #tpu.memory_space<smem>>
    %c2_28 = arith.constant 2 : index
    %c0_29 = arith.constant 0 : index
    %17 = memref.load %arg3[%c2_28, %c0_29] : memref<5x4xf32, #tpu.memory_space<smem>>
    memref.store %16, %arg3[%c2_28, %c0_29] : memref<5x4xf32, #tpu.memory_space<smem>>
    %c1_30 = arith.constant 1 : index
    %c2_31 = arith.constant 2 : index
    %18 = memref.load %arg0[%c1_30, %c2_31] : memref<2x5xf32, #tpu.memory_space<smem>>
    %c2_32 = arith.constant 2 : index
    %c1_33 = arith.constant 1 : index
    %19 = memref.load %arg3[%c2_32, %c1_33] : memref<5x4xf32, #tpu.memory_space<smem>>
    memref.store %18, %arg3[%c2_32, %c1_33] : memref<5x4xf32, #tpu.memory_space<smem>>
    %c2_34 = arith.constant 2 : index
    %c0_35 = arith.constant 0 : index
    %20 = memref.load %arg1[%c2_34, %c0_35] : memref<5x1xf32, #tpu.memory_space<smem>>
    %c2_36 = arith.constant 2 : index
    %c2_37 = arith.constant 2 : index
    %21 = memref.load %arg3[%c2_36, %c2_37] : memref<5x4xf32, #tpu.memory_space<smem>>
    memref.store %20, %arg3[%c2_36, %c2_37] : memref<5x4xf32, #tpu.memory_space<smem>>
    %c2_38 = arith.constant 2 : index
    %22 = memref.load %arg2[%c2_38] : memref<5xf32, #tpu.memory_space<smem>>
    %c2_39 = arith.constant 2 : index
    %c3_40 = arith.constant 3 : index
    %23 = memref.load %arg3[%c2_39, %c3_40] : memref<5x4xf32, #tpu.memory_space<smem>>
    memref.store %22, %arg3[%c2_39, %c3_40] : memref<5x4xf32, #tpu.memory_space<smem>>
    %c0_41 = arith.constant 0 : index
    %c3_42 = arith.constant 3 : index
    %24 = memref.load %arg0[%c0_41, %c3_42] : memref<2x5xf32, #tpu.memory_space<smem>>
    %c3_43 = arith.constant 3 : index
    %c0_44 = arith.constant 0 : index
    %25 = memref.load %arg3[%c3_43, %c0_44] : memref<5x4xf32, #tpu.memory_space<smem>>
    memref.store %24, %arg3[%c3_43, %c0_44] : memref<5x4xf32, #tpu.memory_space<smem>>
    %c1_45 = arith.constant 1 : index
    %c3_46 = arith.constant 3 : index
    %26 = memref.load %arg0[%c1_45, %c3_46] : memref<2x5xf32, #tpu.memory_space<smem>>
    %c3_47 = arith.constant 3 : index
    %c1_48 = arith.constant 1 : index
    %27 = memref.load %arg3[%c3_47, %c1_48] : memref<5x4xf32, #tpu.memory_space<smem>>
    memref.store %26, %arg3[%c3_47, %c1_48] : memref<5x4xf32, #tpu.memory_space<smem>>
    %c3_49 = arith.constant 3 : index
    %c0_50 = arith.constant 0 : index
    %28 = memref.load %arg1[%c3_49, %c0_50] : memref<5x1xf32, #tpu.memory_space<smem>>
    %c3_51 = arith.constant 3 : index
    %c2_52 = arith.constant 2 : index
    %29 = memref.load %arg3[%c3_51, %c2_52] : memref<5x4xf32, #tpu.memory_space<smem>>
    memref.store %28, %arg3[%c3_51, %c2_52] : memref<5x4xf32, #tpu.memory_space<smem>>
    %c3_53 = arith.constant 3 : index
    %30 = memref.load %arg2[%c3_53] : memref<5xf32, #tpu.memory_space<smem>>
    %c3_54 = arith.constant 3 : index
    %c3_55 = arith.constant 3 : index
    %31 = memref.load %arg3[%c3_54, %c3_55] : memref<5x4xf32, #tpu.memory_space<smem>>
    memref.store %30, %arg3[%c3_54, %c3_55] : memref<5x4xf32, #tpu.memory_space<smem>>
    %c0_56 = arith.constant 0 : index
    %c4 = arith.constant 4 : index
    %32 = memref.load %arg0[%c0_56, %c4] : memref<2x5xf32, #tpu.memory_space<smem>>
    %c4_57 = arith.constant 4 : index
    %c0_58 = arith.constant 0 : index
    %33 = memref.load %arg3[%c4_57, %c0_58] : memref<5x4xf32, #tpu.memory_space<smem>>
    memref.store %32, %arg3[%c4_57, %c0_58] : memref<5x4xf32, #tpu.memory_space<smem>>
    %c1_59 = arith.constant 1 : index
    %c4_60 = arith.constant 4 : index
    %34 = memref.load %arg0[%c1_59, %c4_60] : memref<2x5xf32, #tpu.memory_space<smem>>
    %c4_61 = arith.constant 4 : index
    %c1_62 = arith.constant 1 : index
    %35 = memref.load %arg3[%c4_61, %c1_62] : memref<5x4xf32, #tpu.memory_space<smem>>
    memref.store %34, %arg3[%c4_61, %c1_62] : memref<5x4xf32, #tpu.memory_space<smem>>
    %c4_63 = arith.constant 4 : index
    %c0_64 = arith.constant 0 : index
    %36 = memref.load %arg1[%c4_63, %c0_64] : memref<5x1xf32, #tpu.memory_space<smem>>
    %c4_65 = arith.constant 4 : index
    %c2_66 = arith.constant 2 : index
    %37 = memref.load %arg3[%c4_65, %c2_66] : memref<5x4xf32, #tpu.memory_space<smem>>
    memref.store %36, %arg3[%c4_65, %c2_66] : memref<5x4xf32, #tpu.memory_space<smem>>
    %c4_67 = arith.constant 4 : index
    %38 = memref.load %arg2[%c4_67] : memref<5xf32, #tpu.memory_space<smem>>
    %c4_68 = arith.constant 4 : index
    %c3_69 = arith.constant 3 : index
    %39 = memref.load %arg3[%c4_68, %c3_69] : memref<5x4xf32, #tpu.memory_space<smem>>
    memref.store %38, %arg3[%c4_68, %c3_69] : memref<5x4xf32, #tpu.memory_space<smem>>
    return
  }
}

</mosaic_0001>

<bundles_post_ra>
// kernel: tpu_custom_call.1
= control target key start
LH: loop header
LB: loop body
LE: loop exit
PB: predicated region body
PF: predicated region fallthrough
CT: control target
= control target key end

     0   :  { %8 = vsyncpa [#allocation3], 0  ;;  %s239_s0 = inlined_call_operand.vmem [shape: f32[2,5], index: 0, kind: input, shape index: {}]   ;;  %s240_s1 = inlined_call_operand.vmem [shape: f32[5,1], index: 1, kind: input, shape index: {}]   ;;  %s241_s2 = inlined_call_operand.vmem [shape: f32[5], index: 2, kind: input, shape index: {}]   ;;  %s242_s3 = inlined_call_operand.vmem [shape: f32[5,4], index: 3, kind: output, shape index: {}]  }
   0x1   :  { %9 = vsyncpa [#allocation6], 0  ;;  %s27_s14 = sshll.u32 %s240_s1, 4  ;;  %s28_s14 = int_to_ptr.vmem [resolvable:$true] %s27_s14 }
   0x2   :  { %10 = vsyncpa [#allocation4], 0  ;;  %s17_s17 = sshll.u32 %s239_s0, 4  ;;  %s149_s18 = scalar_lea.vmem %s28_s14, 128  ;;  %s18_s17 = int_to_ptr.vmem [resolvable:$true] %s17_s17 }
   0x3   :  { %p150_p0 = scmp.ne.s32.totalorder %s28_s14, %s149_s18  ;;  %p154_p1 = scmp.lt.s32.totalorder %s28_s14, %s28_s14 }
   0x4   :  { %p155_p2 = scmp.lt.s32.totalorder %s149_s18, %s149_s18 }
   0x6   :  { %p156_p3 = por %p155_p2, %p154_p1 }
   0x8   :  { %p157_p4 = pnand %p156_p3, %p150_p0 }
   0xa   :  { %160 = shalt.err (!%p157_p4)
}
   0xb   :  { %s203_s19 = smov [#allocation5]   ;;  %s161_s20 = scalar_lea.vmem %s18_s17, 32 }
   0xc   :  { %30 = dma.vmem_to_smem %s28_s14, 128, %s203_s19, [#allocation6]  }
   0xd   :  { %p162_p5 = scmp.ne.s32.totalorder %s18_s17, %s161_s20  ;;  %p166_p6 = scmp.lt.s32.totalorder %s18_s17, %s18_s17 }
   0xe   :  { %p167_p7 = scmp.lt.s32.totalorder %s161_s20, %s161_s20 }
  0x10   :  { %p168_p8 = por %p167_p7, %p166_p6 }
  0x12   :  { %p169_p9 = pnand %p168_p8, %p162_p5 }
  0x14   :  { %172 = shalt.err (!%p169_p9)
}
  0x15   :  { %s204_s1 = smov [#allocation2]   ;;  %s37_s22 = sshll.u32 %s241_s2, 4  ;;  %s38_s22 = int_to_ptr.vmem [resolvable:$true] %s37_s22 }
  0x16   :  { %20 = dma.vmem_to_smem %s18_s17, 32, %s204_s1, [#allocation3]  }
  0x17   :  { %s173_s23 = scalar_lea.vmem %s38_s22, 16  ;;  %p178_p11 = scmp.lt.s32.totalorder %s38_s22, %s38_s22 }
  0x18   :  { %p174_p10 = scmp.ne.s32.totalorder %s38_s22, %s173_s23  ;;  %p179_p12 = scmp.lt.s32.totalorder %s173_s23, %s173_s23 }
  0x1a   :  { %p180_p13 = por %p179_p12, %p178_p11 }
  0x1c   :  { %p181_p0 = pnand %p180_p13, %p174_p10 }
  0x1e   :  { %184 = shalt.err (!%p181_p0)
}
  0x1f   :  { %s205_s24 = smov [#allocation7]  }
  0x20   :  { %40 = dma.vmem_to_smem %s38_s22, 16, %s205_s24, [#allocation6]  }
  0x21   :  { %197 = dma.done.wait [#allocation3], 32  }
  0x22   :  { %198 = vsyncadd [#allocation3], 4294967264 }
  0x23   :  { %199 = dma.done.wait [#allocation6], 144  }
  0x24   :  { %200 = vsyncadd [#allocation6], 4294967152 }
  0x25   :  { %50 = sfence }
  0x26   :  { %s51_s25 = sld [smem:[#allocation2]]  ;;  %s129_s2 = sld [smem:[#allocation2 + $0x1]] }
  0x27   :  { %s128_s26 = sld [smem:[#allocation2 + $0x80]]  ;;  %s130_s29 = sld [smem:[#allocation2 + $0x81]] }
  0x28   :  { %s57_s27 = sld [smem:[#allocation5]]  ;;  %s132_s4 = sld [smem:[#allocation7 + $0x1]] }
  0x29   :  { %s60_s28 = sld [smem:[#allocation7]]  ;;  %s133_s5 = sld [smem:[#allocation2 + $0x2]] }
  0x2a   :  { %s131_s30 = sld [smem:[#allocation5 + $0x80]]  ;;  %s134_s6 = sld [smem:[#allocation2 + $0x82]] }
  0x2b   :  { %s135_s7 = sld [smem:[#allocation5 + $0x100]]  ;;  %s136_s8 = sld [smem:[#allocation7 + $0x2]] }
  0x2c   :  { %53 = sst [smem:[#allocation8]] %s51_s25  ;;  %s137_s9 = sld [smem:[#allocation2 + $0x3]] }
  0x2d   :  { %56 = sst [smem:[#allocation8 + $0x1]] %s128_s26  ;;  %s138_s10 = sld [smem:[#allocation2 + $0x83]] }
  0x2e   :  { %59 = sst [smem:[#allocation8 + $0x2]] %s57_s27  ;;  %s139_s11 = sld [smem:[#allocation5 + $0x180]] }
  0x2f   :  { %62 = sst [smem:[#allocation8 + $0x3]] %s60_s28  ;;  %s141_s13 = sld [smem:[#allocation2 + $0x4]] }
  0x30   :  { %65 = sst [smem:[#allocation8 + $0x80]] %s129_s2  ;;  %s140_s12 = sld [smem:[#allocation7 + $0x3]] }
  0x31   :  { %68 = sst [smem:[#allocation8 + $0x81]] %s130_s29  ;;  %s142_s14 = sld [smem:[#allocation2 + $0x84]] }
  0x32   :  { %71 = sst [smem:[#allocation8 + $0x82]] %s131_s30  ;;  %s143_s15 = sld [smem:[#allocation5 + $0x200]] }
  0x33   :  { %74 = sst [smem:[#allocation8 + $0x83]] %s132_s4  ;;  %s144_s16 = sld [smem:[#allocation7 + $0x4]] }
  0x34   :  { %77 = sst [smem:[#allocation8 + $0x100]] %s133_s5  ;;  %s117_s19 = sshll.u32 %s242_s3, 4  ;;  %s118_s19 = int_to_ptr.vmem [resolvable:$true] %s117_s19 }
  0x35   :  { %80 = sst [smem:[#allocation8 + $0x101]] %s134_s6  ;;  %s185_s20 = scalar_lea.vmem %s118_s19, 128 }
  0x36   :  { %83 = sst [smem:[#allocation8 + $0x102]] %s135_s7  ;;  %p186_p1 = scmp.ne.s32.totalorder %s118_s19, %s185_s20 }
  0x37   :  { %86 = sst [smem:[#allocation8 + $0x103]] %s136_s8  ;;  %p190_p2 = scmp.lt.s32.totalorder %s118_s19, %s118_s19 }
  0x38   :  { %89 = sst [smem:[#allocation8 + $0x180]] %s137_s9  ;;  %p191_p3 = scmp.lt.s32.totalorder %s185_s20, %s185_s20 }
  0x39   :  { %92 = sst [smem:[#allocation8 + $0x181]] %s138_s10 }
  0x3a   :  { %95 = sst [smem:[#allocation8 + $0x182]] %s139_s11  ;;  %p192_p4 = por %p191_p3, %p190_p2 }
  0x3b   :  { %98 = sst [smem:[#allocation8 + $0x183]] %s140_s12 }
  0x3c   :  { %101 = sst [smem:[#allocation8 + $0x200]] %s141_s13  ;;  %p193_p5 = pnand %p192_p4, %p186_p1 }
  0x3d   :  { %104 = sst [smem:[#allocation8 + $0x201]] %s142_s14 }
  0x3e   :  { %107 = sst [smem:[#allocation8 + $0x202]] %s143_s15 }
  0x3f   :  { %110 = sst [smem:[#allocation8 + $0x203]] %s144_s16 }
  0x40   :  { %196 = shalt.err (!%p193_p5)
}
  0x41   :  { %s206_s1 = smov [#allocation8]  }
  0x42   :  { %120 = dma.smem_to_vmem %s206_s1, 128, %s118_s19, [#allocation4]  }
  0x43   :  { %201 = dma.done.wait [#allocation4], 128  }
  0x44   :  { %202 = vsyncadd [#allocation4], 4294967168 }
  0x45   :  { %124 = sfence }
  0x46   :  { %125 = vsyncpa [#allocation3], 1 }
  0x47   :  { %126 = vsyncpa [#allocation6], 1 }
  0x48   :  { %127 = vsyncpa [#allocation4], 1 }

</bundles_post_ra>
